<compile_context>
chip_gen: v7x
topology: tpu7x:2x2x1
jax: 0.10.0
libtpu: 0.0.40
codegen_flags: <defaults>
</compile_context>

<pallas_src>
import functools
import math

import jax
import jax.numpy as jnp
from jax import lax
from jax.experimental import pallas as pl
from jax.experimental.pallas import tpu as pltpu

_LANE = 128   # pad lane (last) dims of weights/outputs to multiples of this


def _round_up(n, m):
    return ((n + m - 1) // m) * m


def _pad_axis(x, target, axis):
    pad = target - x.shape[axis]
    if pad <= 0:
        return x
    widths = [(0, 0)] * x.ndim
    widths[axis] = (0, pad)
    return jnp.pad(x, widths)   # zero padding keeps the math exact


# ----------------------------------------------------------------------------
# Pallas kernel: fused split-K stub encoder -> *pred_coeff -> Linear -> GELU
#                -> [Dropout = id] -> Linear
# ----------------------------------------------------------------------------
def _fused_moco_kernel(pc_ref, lc_ref, sp_ref, we_lc_ref, we_sp_ref, be_ref,
                       w1_ref, b1_ref, w2_ref, b2_ref, o_ref,
                       *, matmul_dtype, approximate_gelu):
    c = pc_ref[0, 0]                                   # pred_coeff (SMEM scalar)

    lc = lc_ref[...]                                   # (tm, F_lc) f32
    sp = sp_ref[...]                                   # (tm, F_sp) f32
    if matmul_dtype != jnp.float32:
        lc = lc.astype(matmul_dtype)
        sp = sp.astype(matmul_dtype)

    # Stub moco encoder: split-K matmul into one f32 accumulator (no HBM concat).
    q = jnp.dot(lc, we_lc_ref[...], preferred_element_type=jnp.float32)
    q = q + jnp.dot(sp, we_sp_ref[...], preferred_element_type=jnp.float32)
    q = (q + be_ref[...]) * c                          # pred_coeff scale (VPU bcast mul)

    qm = q.astype(matmul_dtype) if matmul_dtype != jnp.float32 else q
    h = jnp.dot(qm, w1_ref[...], preferred_element_type=jnp.float32) + b1_ref[...]

    if approximate_gelu:
        # tanh-approx GELU: EUP slot (free-ish); tiny numeric delta vs. exact erf.
        h = jax.nn.gelu(h, approximate=True)
    else:
        # Exact GELU (PyTorch nn.GELU default): 0.5 * x * (1 + erf(x / sqrt(2)))
        h = 0.5 * h * (1.0 + lax.erf(h * (1.0 / math.sqrt(2.0))))

    # Dropout(p=0.3): identity in eval mode (deterministic forward).
    # TODO(synk): train-mode dropout would use pltpu.prng_seed + prng_random_bits.

    hm = h.astype(matmul_dtype) if matmul_dtype != jnp.float32 else h
    out = jnp.dot(hm, w2_ref[...], preferred_element_type=jnp.float32) + b2_ref[...]
    o_ref[...] = out.astype(o_ref.dtype)


# ----------------------------------------------------------------------------
# One-time parameter preparation: split encoder weights, pad to lane multiples,
# cast weights to the MXU operand dtype. Biases stay f32.
# ----------------------------------------------------------------------------
def prepare_padded_params(params, lc_feat_dim, matmul_dtype=jnp.float32):
    enc_w = params["enc_w"]                            # (F, in_dim)
    in_dim = enc_w.shape[1]
    hidden_dim = params["w1"].shape[1]
    out_dim = params["w2"].shape[1]
    in_p = _round_up(in_dim, _LANE)
    hid_p = _round_up(hidden_dim, _LANE)
    out_p = _round_up(out_dim, _LANE)

    we_lc = _pad_axis(enc_w[:lc_feat_dim], in_p, 1).astype(matmul_dtype)
    we_sp = _pad_axis(enc_w[lc_feat_dim:], in_p, 1).astype(matmul_dtype)
    be = _pad_axis(params["enc_b"].reshape(1, in_dim).astype(jnp.float32), in_p, 1)
    w1 = _pad_axis(_pad_axis(params["w1"], in_p, 0), hid_p, 1).astype(matmul_dtype)
    b1 = _pad_axis(params["b1"].reshape(1, hidden_dim).astype(jnp.float32), hid_p, 1)
    w2 = _pad_axis(_pad_axis(params["w2"], hid_p, 0), out_p, 1).astype(matmul_dtype)
    b2 = _pad_axis(params["b2"].reshape(1, out_dim).astype(jnp.float32), out_p, 1)
    return {"we_lc": we_lc, "we_sp": we_sp, "be": be,
            "w1": w1, "b1": b1, "w2": w2, "b2": b2}


# ----------------------------------------------------------------------------
# MocoTuner forward (thin glue + single fused Pallas call)
# ----------------------------------------------------------------------------
def moco_tuner_forward(padded, lightcurves, spectra, pred_coeff=1.0,
                       w=None, w_tune=None, *, out_dim, approximate_gelu=None):
    """Mirrors MocoTuner.forward: preds = pred_layer(moco_model(lc, sp)['q'])."""
    # TODO(synk): `w` / `w_tune` are consumed by the external moco_model, which
    # is stood in here by a deterministic linear encoder; they are unused.
    del w, w_tune

    matmul_dtype = padded["w1"].dtype
    if approximate_gelu is None:
        approximate_gelu = matmul_dtype != jnp.float32   # tanh GELU on bf16 path

    B = lightcurves.shape[0]
    lc_flat = lightcurves.reshape(B, -1).astype(jnp.float32)
    sp_flat = spectra.reshape(B, -1).astype(jnp.float32)
    F_lc = lc_flat.shape[1]
    F_sp = sp_flat.shape[1]
    assert padded["we_lc"].shape[0] == F_lc and padded["we_sp"].shape[0] == F_sp

    in_p = padded["we_lc"].shape[1]
    hid_p = padded["w1"].shape[1]
    out_p = padded["w2"].shape[1]

    # Batch tiling: dtype-dependent sublane rounding (8 f32 / 16 bf16); a
    # "parallel" grid axis over batch tiles lets v7x's 2 TCs split the work.
    sub = 8 if matmul_dtype == jnp.float32 else 16
    tm = min(256, _round_up(B, sub))
    Bp = _round_up(B, tm)
    lc_p = _pad_axis(lc_flat, Bp, 0)
    sp_p = _pad_axis(sp_flat, Bp, 0)
    n_m = Bp // tm

    pc = jnp.asarray(pred_coeff, jnp.float32).reshape(1, 1)

    kernel = functools.partial(_fused_moco_kernel,
                               matmul_dtype=matmul_dtype,
                               approximate_gelu=approximate_gelu)

    # VMEM budget: double-buffered activation/output tiles + resident weights.
    wbytes = jnp.dtype(matmul_dtype).itemsize
    blk = (2 * (tm * F_lc + tm * F_sp) * 4
           + 2 * (F_lc * in_p + F_sp * in_p + in_p * hid_p + hid_p * out_p) * wbytes
           + 2 * (in_p + hid_p + out_p) * 4
           + 2 * tm * out_p * 4)
    # TODO(synk): at realistic MoCo dims on v7x (64 MiB VMEM) keep blk under
    # ~48 MiB by additionally tiling the encoder contraction dim (K) with an
    # f32 accumulator scratch and a trailing "arbitrary" grid axis.
    vmem_limit = min(100 << 20, max(8 << 20, int(blk * 1.25) + (2 << 20)))

    flops = 2 * Bp * (F_lc * in_p + F_sp * in_p + in_p * hid_p + hid_p * out_p)
    bytes_accessed = (lc_p.nbytes + sp_p.nbytes + pc.nbytes
                      + sum(v.nbytes for v in padded.values())
                      + Bp * out_p * 4)
    cost = pl.CostEstimate(flops=flops, transcendentals=Bp * hid_p,
                           bytes_accessed=bytes_accessed)

    smem_spec = pl.BlockSpec(memory_space=pltpu.MemorySpace.SMEM)
    const = lambda shape: pl.BlockSpec(shape, lambda i: (0, 0))

    out_padded = pl.pallas_call(
        kernel,
        out_shape=jax.ShapeDtypeStruct((Bp, out_p), jnp.float32),
        grid=(n_m,),
        in_specs=[
            smem_spec,                                         # pred_coeff (1,1)
            pl.BlockSpec((tm, F_lc), lambda i: (i, 0)),        # lightcurve features
            pl.BlockSpec((tm, F_sp), lambda i: (i, 0)),        # spectra features
            const((F_lc, in_p)),                               # we_lc (resident)
            const((F_sp, in_p)),                               # we_sp
            const((1, in_p)),                                  # be
            const((in_p, hid_p)),                              # w1
            const((1, hid_p)),                                 # b1
            const((hid_p, out_p)),                             # w2
            const((1, out_p)),                                 # b2
        ],
        out_specs=pl.BlockSpec((tm, out_p), lambda i: (i, 0)),
        compiler_params=pltpu.CompilerParams(
            dimension_semantics=("parallel",),
            vmem_limit_bytes=vmem_limit),
        cost_estimate=cost,
    )(pc, lc_p, sp_p, padded["we_lc"], padded["we_sp"], padded["be"],
      padded["w1"], padded["b1"], padded["w2"], padded["b2"])

    return out_padded[:B, :out_dim]


# ----------------------------------------------------------------------------
# Deterministic parameter init (shapes implied by MocoTuner.__init__)
# ----------------------------------------------------------------------------
def init_params(key, feat_dim, in_dim, hidden_dim, out_dim):
    k = jax.random.split(key, 6)
    scale_enc = 1.0 / math.sqrt(feat_dim)
    scale1 = 1.0 / math.sqrt(in_dim)
    scale2 = 1.0 / math.sqrt(hidden_dim)
    return {
        # stub moco encoder
        "enc_w": jax.random.uniform(k[0], (feat_dim, in_dim), jnp.float32,
                                    -scale_enc, scale_enc),
        "enc_b": jax.random.uniform(k[1], (in_dim,), jnp.float32,
                                    -scale_enc, scale_enc),
        # pred_layer: Linear(in_dim, hidden_dim)
        "w1": jax.random.uniform(k[2], (in_dim, hidden_dim), jnp.float32,
                                 -scale1, scale1),
        "b1": jax.random.uniform(k[3], (hidden_dim,), jnp.float32,
                                 -scale1, scale1),
        # pred_layer: Linear(hidden_dim, out_dim)
        "w2": jax.random.uniform(k[4], (hidden_dim, out_dim), jnp.float32,
                                 -scale2, scale2),
        "b2": jax.random.uniform(k[5], (out_dim,), jnp.float32,
                                 -scale2, scale2),
    }


if __name__ == "__main__":
    # Small shapes consistent with the forward pass.
    B = 8                 # batch
    LC_LEN = 64           # lightcurve length
    SP_LEN = 64           # spectrum length
    IN_DIM = 32           # tune_args['in_dim']   (moco embedding dim)
    HIDDEN_DIM = 64       # tune_args['hidden_dim']
    OUT_DIM = 16          # tune_args['out_dim']

    key = jax.random.PRNGKey(0)
    k_lc, k_sp, k_params = jax.random.split(key, 3)

    lightcurves = jax.random.normal(k_lc, (B, 1, LC_LEN), jnp.float32)
    spectra = jax.random.normal(k_sp, (B, 1, SP_LEN), jnp.float32)

    params = init_params(k_params, feat_dim=LC_LEN + SP_LEN,
                         in_dim=IN_DIM, hidden_dim=HIDDEN_DIM, out_dim=OUT_DIM)

    def ref_forward(pred_coeff):
        feats = jnp.concatenate(
            [lightcurves.reshape(B, -1), spectra.reshape(B, -1)], axis=-1)
        q = (feats @ params["enc_w"] + params["enc_b"]) * pred_coeff
        h = jax.nn.gelu(q @ params["w1"] + params["b1"], approximate=False)
        return h @ params["w2"] + params["b2"]

    # f32 path: exact-erf GELU, tight tolerance (nn.GELU parity).
    padded_f32 = jax.tree_util.tree_map(
        jax.block_until_ready,
        prepare_padded_params(params, lc_feat_dim=LC_LEN, matmul_dtype=jnp.float32))
    for pc in (1, 1.5):
        preds = moco_tuner_forward(padded_f32, lightcurves, spectra,
                                   pred_coeff=pc, out_dim=OUT_DIM)
        preds = jax.block_until_ready(preds)
        ref = ref_forward(pc)
        assert preds.shape == (B, OUT_DIM)
        assert jnp.allclose(preds, ref, atol=1e-4, rtol=1e-4), \
            float(jnp.max(jnp.abs(preds - ref)))

    # bf16 MXU-operand path (pre-cast weights, f32 accumulate, tanh GELU):
    # looser tolerance — bf16 operands + intermediate downcasts are NOT
    # expected to match the f32 reference to 1e-4.
    padded_bf16 = prepare_padded_params(params, lc_feat_dim=LC_LEN,
                                        matmul_dtype=jnp.bfloat16)
    preds_bf16 = jax.block_until_ready(
        moco_tuner_forward(padded_bf16, lightcurves, spectra,
                           pred_coeff=1.5, out_dim=OUT_DIM))
    assert preds_bf16.shape == (B, OUT_DIM)
    assert jnp.allclose(preds_bf16, ref_forward(1.5), atol=5e-2, rtol=5e-2), \
        float(jnp.max(jnp.abs(preds_bf16 - ref_forward(1.5))))

    print("KERNEL_OK")
</pallas_src>

<mosaic_0001>
module attributes {stable_mosaic.version = 11 : i64} {
  func.func @_fused_moco_kernel(%arg0: i32, %arg1: memref<1x1xf32, #tpu.memory_space<smem>>, %arg2: memref<8x64xf32, #tpu.memory_space<vmem>>, %arg3: memref<8x64xf32, #tpu.memory_space<vmem>>, %arg4: memref<64x128xf32, #tpu.memory_space<vmem>>, %arg5: memref<64x128xf32, #tpu.memory_space<vmem>>, %arg6: memref<1x128xf32, #tpu.memory_space<vmem>>, %arg7: memref<128x128xf32, #tpu.memory_space<vmem>>, %arg8: memref<1x128xf32, #tpu.memory_space<vmem>>, %arg9: memref<128x128xf32, #tpu.memory_space<vmem>>, %arg10: memref<1x128xf32, #tpu.memory_space<vmem>>, %arg11: memref<8x128xf32, #tpu.memory_space<vmem>>) attributes {dimension_semantics = [#tpu.dimension_semantics<parallel>], iteration_bounds = array<i64: 1>, scalar_prefetch = 0 : i64, scratch_operands = 0 : i64, tpu.core_type = #tpu.core_type<tc>, window_params = [{transform_indices = @transform_0, window_bounds = array<i64: 1, 1>}, {transform_indices = @transform_1, window_bounds = array<i64: 8, 64>}, {transform_indices = @transform_2, window_bounds = array<i64: 8, 64>}, {pipeline_mode = #tpu.pipeline_mode<synchronous>, transform_indices = @transform_3, window_bounds = array<i64: 64, 128>}, {pipeline_mode = #tpu.pipeline_mode<synchronous>, transform_indices = @transform_4, window_bounds = array<i64: 64, 128>}, {pipeline_mode = #tpu.pipeline_mode<synchronous>, transform_indices = @transform_5, window_bounds = array<i64: 1, 128>}, {pipeline_mode = #tpu.pipeline_mode<synchronous>, transform_indices = @transform_6, window_bounds = array<i64: 128, 128>}, {pipeline_mode = #tpu.pipeline_mode<synchronous>, transform_indices = @transform_7, window_bounds = array<i64: 1, 128>}, {pipeline_mode = #tpu.pipeline_mode<synchronous>, transform_indices = @transform_8, window_bounds = array<i64: 128, 128>}, {pipeline_mode = #tpu.pipeline_mode<synchronous>, transform_indices = @transform_9, window_bounds = array<i64: 1, 128>}, {transform_indices = @transform_10, window_bounds = array<i64: 8, 128>}]} {
    %c0 = arith.constant 0 : index
    %c0_0 = arith.constant 0 : index
    %0 = memref.load %arg1[%c0, %c0_0] : memref<1x1xf32, #tpu.memory_space<smem>>
    %c0_1 = arith.constant 0 : index
    %c0_2 = arith.constant 0 : index
    %1 = vector.load %arg2[%c0_1, %c0_2] : memref<8x64xf32, #tpu.memory_space<vmem>>, vector<8x64xf32>
    %c0_3 = arith.constant 0 : index
    %c0_4 = arith.constant 0 : index
    %2 = vector.load %arg3[%c0_3, %c0_4] : memref<8x64xf32, #tpu.memory_space<vmem>>, vector<8x64xf32>
    %c0_5 = arith.constant 0 : index
    %c0_6 = arith.constant 0 : index
    %3 = vector.load %arg4[%c0_5, %c0_6] : memref<64x128xf32, #tpu.memory_space<vmem>>, vector<64x128xf32>
    %cst = arith.constant dense<0.000000e+00> : vector<8x128xf32>
    %4 = tpu.matmul %1, %3, %cst {dimension_numbers = #tpu.dot_dimension_numbers<[1], [0], [0], [1], [0, 0, 1, 1], [], []>} : vector<8x64xf32>, vector<64x128xf32>, vector<8x128xf32> -> vector<8x128xf32>
    %c0_7 = arith.constant 0 : index
    %c0_8 = arith.constant 0 : index
    %5 = vector.load %arg5[%c0_7, %c0_8] : memref<64x128xf32, #tpu.memory_space<vmem>>, vector<64x128xf32>
    %cst_9 = arith.constant dense<0.000000e+00> : vector<8x128xf32>
    %6 = tpu.matmul %2, %5, %cst_9 {dimension_numbers = #tpu.dot_dimension_numbers<[1], [0], [0], [1], [0, 0, 1, 1], [], []>} : vector<8x64xf32>, vector<64x128xf32>, vector<8x128xf32> -> vector<8x128xf32>
    %7 = arith.addf %4, %6 : vector<8x128xf32>
    %c0_10 = arith.constant 0 : index
    %c0_11 = arith.constant 0 : index
    %8 = vector.load %arg6[%c0_10, %c0_11] : memref<1x128xf32, #tpu.memory_space<vmem>>, vector<1x128xf32>
    %9 = vector.broadcast %8 : vector<1x128xf32> to vector<8x128xf32>
    %10 = arith.addf %7, %9 : vector<8x128xf32>
    %11 = vector.broadcast %0 : f32 to vector<8x128xf32>
    %12 = arith.mulf %10, %11 : vector<8x128xf32>
    %c0_12 = arith.constant 0 : index
    %c0_13 = arith.constant 0 : index
    %13 = vector.load %arg7[%c0_12, %c0_13] : memref<128x128xf32, #tpu.memory_space<vmem>>, vector<128x128xf32>
    %cst_14 = arith.constant dense<0.000000e+00> : vector<8x128xf32>
    %14 = tpu.matmul %12, %13, %cst_14 {dimension_numbers = #tpu.dot_dimension_numbers<[1], [0], [0], [1], [0, 0, 1, 1], [], []>} : vector<8x128xf32>, vector<128x128xf32>, vector<8x128xf32> -> vector<8x128xf32>
    %c0_15 = arith.constant 0 : index
    %c0_16 = arith.constant 0 : index
    %15 = vector.load %arg8[%c0_15, %c0_16] : memref<1x128xf32, #tpu.memory_space<vmem>>, vector<1x128xf32>
    %16 = vector.broadcast %15 : vector<1x128xf32> to vector<8x128xf32>
    %17 = arith.addf %14, %16 : vector<8x128xf32>
    %cst_17 = arith.constant 5.000000e-01 : f32
    %18 = vector.broadcast %cst_17 : f32 to vector<8x128xf32>
    %19 = arith.mulf %18, %17 : vector<8x128xf32>
    %cst_18 = arith.constant 0.707106769 : f32
    %20 = vector.broadcast %cst_18 : f32 to vector<8x128xf32>
    %21 = arith.mulf %17, %20 : vector<8x128xf32>
    %22 = math.erf %21 : vector<8x128xf32>
    %cst_19 = arith.constant 1.000000e+00 : f32
    %23 = vector.broadcast %cst_19 : f32 to vector<8x128xf32>
    %24 = arith.addf %23, %22 : vector<8x128xf32>
    %25 = arith.mulf %19, %24 : vector<8x128xf32>
    %c0_20 = arith.constant 0 : index
    %c0_21 = arith.constant 0 : index
    %26 = vector.load %arg9[%c0_20, %c0_21] : memref<128x128xf32, #tpu.memory_space<vmem>>, vector<128x128xf32>
    %cst_22 = arith.constant dense<0.000000e+00> : vector<8x128xf32>
    %27 = tpu.matmul %25, %26, %cst_22 {dimension_numbers = #tpu.dot_dimension_numbers<[1], [0], [0], [1], [0, 0, 1, 1], [], []>} : vector<8x128xf32>, vector<128x128xf32>, vector<8x128xf32> -> vector<8x128xf32>
    %c0_23 = arith.constant 0 : index
    %c0_24 = arith.constant 0 : index
    %28 = vector.load %arg10[%c0_23, %c0_24] : memref<1x128xf32, #tpu.memory_space<vmem>>, vector<1x128xf32>
    %29 = vector.broadcast %28 : vector<1x128xf32> to vector<8x128xf32>
    %30 = arith.addf %27, %29 : vector<8x128xf32>
    %c0_25 = arith.constant 0 : index
    %c0_26 = arith.constant 0 : index
    %31 = vector.load %arg11[%c0_25, %c0_26] : memref<8x128xf32, #tpu.memory_space<vmem>>, vector<8x128xf32>
    tpu.vector_store %arg11[%c0_25, %c0_26], %30 {strides = array<i32>} : memref<8x128xf32, #tpu.memory_space<vmem>>, vector<8x128xf32>,
    return
  }
  func.func @transform_0(%arg0: i32) -> (i32, i32) {
    %c0_i32 = arith.constant 0 : i32
    %c0_i32_0 = arith.constant 0 : i32
    %c0_i32_1 = arith.constant 0 : i32
    return %c0_i32, %c0_i32_0 : i32, i32
  }
  func.func @transform_1(%arg0: i32) -> (i32, i32) {
    %c0_i32 = arith.constant 0 : i32
    %c0_i32_0 = arith.constant 0 : i32
    return %arg0, %c0_i32 : i32, i32
  }
  func.func @transform_2(%arg0: i32) -> (i32, i32) {
    %c0_i32 = arith.constant 0 : i32
    %c0_i32_0 = arith.constant 0 : i32
    return %arg0, %c0_i32 : i32, i32
  }
  func.func @transform_3(%arg0: i32) -> (i32, i32) {
    %c0_i32 = arith.constant 0 : i32
    %c0_i32_0 = arith.constant 0 : i32
    %c0_i32_1 = arith.constant 0 : i32
    return %c0_i32, %c0_i32_0 : i32, i32
  }
  func.func @transform_4(%arg0: i32) -> (i32, i32) {
    %c0_i32 = arith.constant 0 : i32
    %c0_i32_0 = arith.constant 0 : i32
    %c0_i32_1 = arith.constant 0 : i32
    return %c0_i32, %c0_i32_0 : i32, i32
  }
  func.func @transform_5(%arg0: i32) -> (i32, i32) {
    %c0_i32 = arith.constant 0 : i32
    %c0_i32_0 = arith.constant 0 : i32
    %c0_i32_1 = arith.constant 0 : i32
    return %c0_i32, %c0_i32_0 : i32, i32
  }
  func.func @transform_6(%arg0: i32) -> (i32, i32) {
    %c0_i32 = arith.constant 0 : i32
    %c0_i32_0 = arith.constant 0 : i32
    %c0_i32_1 = arith.constant 0 : i32
    return %c0_i32, %c0_i32_0 : i32, i32
  }
  func.func @transform_7(%arg0: i32) -> (i32, i32) {
    %c0_i32 = arith.constant 0 : i32
    %c0_i32_0 = arith.constant 0 : i32
    %c0_i32_1 = arith.constant 0 : i32
    return %c0_i32, %c0_i32_0 : i32, i32
  }
  func.func @transform_8(%arg0: i32) -> (i32, i32) {
    %c0_i32 = arith.constant 0 : i32
    %c0_i32_0 = arith.constant 0 : i32
    %c0_i32_1 = arith.constant 0 : i32
    return %c0_i32, %c0_i32_0 : i32, i32
  }
  func.func @transform_9(%arg0: i32) -> (i32, i32) {
    %c0_i32 = arith.constant 0 : i32
    %c0_i32_0 = arith.constant 0 : i32
    %c0_i32_1 = arith.constant 0 : i32
    return %c0_i32, %c0_i32_0 : i32, i32
  }
  func.func @transform_10(%arg0: i32) -> (i32, i32) {
    %c0_i32 = arith.constant 0 : i32
    %c0_i32_0 = arith.constant 0 : i32
    return %arg0, %c0_i32 : i32, i32
  }
}

</mosaic_0001>

<bundles_post_ra>
// kernel: tpu_custom_call.1
= control target key start
LH: loop header
LB: loop body
LE: loop exit
PB: predicated region body
PF: predicated region fallthrough
CT: control target
= control target key end

     0   :  { %16 = vsyncpa [#allocation4], 0  ;;  %s1119_s0 = inlined_call_operand.<no memory space> [shape: f32[1,1], index: 0, kind: input, shape index: {}]   ;;  %s1120_s1 = inlined_call_operand.hbm [shape: f32[8,64], index: 1, kind: input, shape index: {}]   ;;  %s1121_s2 = inlined_call_operand.hbm [shape: f32[8,64], index: 2, kind: input, shape index: {}]   ;;  %s1122_s3 = inlined_call_operand.hbm [shape: f32[64,128], index: 3, kind: input, shape index: {}]   ;;  %s1123_s4 = inlined_call_operand.hbm [shape: f32[64,128], index: 4, kind: input, shape index: {}]   ;;  %s1124_s5 = inlined_call_operand.vmem [shape: f32[1,128], index: 5, kind: input, shape index: {}]   ;;  %s1125_s6 = inlined_call_operand.hbm [shape: f32[128,128], index: 6, kind: input, shape index: {}]   ;;  %s1126_s7 = inlined_call_operand.vmem [shape: f32[1,128], index: 7, kind: input, shape index: {}]   ;;  %s1127_s8 = inlined_call_operand.hbm [shape: f32[128,128], index: 8, kind: input, shape index: {}]   ;;  %s1128_s9 = inlined_call_operand.vmem [shape: f32[1,128], index: 9, kind: input, shape index: {}]   ;;  %s1129_s10 = inlined_call_operand.hbm [shape: f32[8,128], index: 10, kind: output, shape index: {}]  }
   0x1   :  { %17 = vsyncpa [#allocation7], 0 }
   0x2   :  { %18 = vsyncpa [#allocation10], 0 }
   0x3   :  { %19 = vsyncpa [#allocation13], 0 }
   0x4   :  { %20 = vsyncpa [#allocation5], 0  ;;  %s916_s13 = smov [#allocation6]   ;;  %s752_s17 = scalar_lea.hbm %s1121_s2, 128 }
   0x5   :  { %s39_s14 = sshll.u32 %s916_s13, 4  ;;  %p753_p0 = scmp.ne.s32.totalorder %s1121_s2, %s752_s17  ;;  %s40_s14 = int_to_ptr.vmem [resolvable:$true] %s39_s14 }
   0x6   :  { %p756_p1 = scmp.lt.u32.totalorder %s752_s17, %s1121_s2 }
   0x8   :  { %p758_p2 = pnand %p756_p1, %p753_p0 }
   0xa   :  { %761 = shalt.err (!%p758_p2)
}
   0xb   :  { %s762_s22 = scalar_lea.vmem %s40_s14, 128  ;;  %p767_p4 = scmp.lt.s32.totalorder %s40_s14, %s40_s14 }
   0xc   :  { %p763_p3 = scmp.ne.s32.totalorder %s40_s14, %s762_s22  ;;  %p768_p5 = scmp.lt.s32.totalorder %s762_s22, %s762_s22 }
   0xe   :  { %p769_p6 = por %p768_p5, %p767_p4 }
  0x10   :  { %p770_p7 = pnand %p769_p6, %p763_p3 }
  0x12   :  { %773 = shalt.err (!%p770_p7)
}
  0x13   :  { %42 = dma.hbm_to_vmem [thread:$0]  %s1121_s2, 128, %s40_s14, [#allocation7]  }
  0x14   :  { %s917_s25 = smov [#allocation9]   ;;  %s918_s27 = smov [#allocation3]  }
  0x15   :  { %s60_s26 = sshll.u32 %s917_s25, 4  ;;  %s29_s28 = sshll.u32 %s918_s27, 4  ;;  %s61_s26 = int_to_ptr.vmem [resolvable:$true] %s60_s26  ;;  %s30_s28 = int_to_ptr.vmem [resolvable:$true] %s29_s28 }
  0x16   :  { %s774_s11 = scalar_lea.hbm %s1123_s4, 1024 }
  0x17   :  { %p775_p8 = scmp.ne.s32.totalorder %s1123_s4, %s774_s11  ;;  %p778_p9 = scmp.lt.u32.totalorder %s774_s11, %s1123_s4 }
  0x19   :  { %p780_p10 = pnand %p778_p9, %p775_p8 }
  0x1b   :  { %783 = shalt.err (!%p780_p10)
}
  0x1c   :  { %s784_s2 = scalar_lea.vmem %s61_s26, 1024  ;;  %p789_p12 = scmp.lt.s32.totalorder %s61_s26, %s61_s26 }
  0x1d   :  { %p785_p11 = scmp.ne.s32.totalorder %s61_s26, %s784_s2  ;;  %p790_p13 = scmp.lt.s32.totalorder %s784_s2, %s784_s2 }
  0x1f   :  { %p791_p0 = por %p790_p13, %p789_p12 }
  0x21   :  { %p792_p1 = pnand %p791_p0, %p785_p11 }
  0x23   :  { %795 = shalt.err (!%p792_p1)
}
  0x24   :  { %s919_s14 = smov 128   ;;  %s920_s17 = smov 8  }
  0x25   :  { %66 = dma.hbm_to_vmem [thread:$0]  %s1123_s4, 1024, %s61_s26, [#allocation10], %s919_s14, %s919_s14, %s920_s17  }
  0x26   :  { %s796_s22 = scalar_lea.hbm %s1120_s1, 128 }
  0x27   :  { %p797_p2 = scmp.ne.s32.totalorder %s1120_s1, %s796_s22  ;;  %p800_p3 = scmp.lt.u32.totalorder %s796_s22, %s1120_s1 }
  0x29   :  { %p802_p4 = pnand %p800_p3, %p797_p2 }
  0x2b   :  { %805 = shalt.err (!%p802_p4)
}
  0x2c   :  { %s806_s29 = scalar_lea.vmem %s30_s28, 128  ;;  %p811_p6 = scmp.lt.s32.totalorder %s30_s28, %s30_s28 }
  0x2d   :  { %p807_p5 = scmp.ne.s32.totalorder %s30_s28, %s806_s29  ;;  %p812_p7 = scmp.lt.s32.totalorder %s806_s29, %s806_s29 }
  0x2f   :  { %p813_p8 = por %p812_p7, %p811_p6 }
  0x31   :  { %p814_p9 = pnand %p813_p8, %p807_p5 }
  0x33   :  { %817 = shalt.err (!%p814_p9)
}
  0x34   :  { %32 = dma.hbm_to_vmem [thread:$0]  %s1120_s1, 128, %s30_s28, [#allocation4]  }
  0x35   :  { %s921_s30 = smov [#allocation8]   ;;  %s922_s12 = smov [#allocation11]  }
  0x36   :  { %s48_s11 = sshll.u32 %s921_s30, 4  ;;  %s74_s13 = sshll.u32 %s922_s12, 4  ;;  %s49_s11 = int_to_ptr.vmem [resolvable:$true] %s48_s11  ;;  %s75_s13 = int_to_ptr.vmem [resolvable:$true] %s74_s13 }
  0x37   :  { %s818_s2 = scalar_lea.hbm %s1122_s3, 1024 }
  0x38   :  { %p819_p10 = scmp.ne.s32.totalorder %s1122_s3, %s818_s2  ;;  %p822_p11 = scmp.lt.u32.totalorder %s818_s2, %s1122_s3 }
  0x3a   :  { %p824_p12 = pnand %p822_p11, %p819_p10 }
  0x3c   :  { %827 = shalt.err (!%p824_p12)
}
  0x3d   :  { %s828_s1 = scalar_lea.vmem %s49_s11, 1024  ;;  %p833_p0 = scmp.lt.s32.totalorder %s49_s11, %s49_s11 }
  0x3e   :  { %p829_p13 = scmp.ne.s32.totalorder %s49_s11, %s828_s1  ;;  %p834_p1 = scmp.lt.s32.totalorder %s828_s1, %s828_s1 }
  0x40   :  { %p835_p2 = por %p834_p1, %p833_p0 }
  0x42   :  { %p836_p3 = pnand %p835_p2, %p829_p13 }
  0x44   :  { %839 = shalt.err (!%p836_p3)
}
  0x45   :  { %54 = dma.hbm_to_vmem [thread:$0]  %s1122_s3, 1024, %s49_s11, [#allocation7], %s919_s14, %s919_s14, %s920_s17  }
  0x46   :  { %s840_s25 = scalar_lea.hbm %s1125_s6, 2048 }
  0x47   :  { %p841_p4 = scmp.ne.s32.totalorder %s1125_s6, %s840_s25  ;;  %p844_p5 = scmp.lt.u32.totalorder %s840_s25, %s1125_s6 }
  0x49   :  { %p846_p6 = pnand %p844_p5, %p841_p4 }
  0x4b   :  { %849 = shalt.err (!%p846_p6)
}
  0x4c   :  { %s850_s30 = scalar_lea.vmem %s75_s13, 2048  ;;  %p855_p8 = scmp.lt.s32.totalorder %s75_s13, %s75_s13 }
  0x4d   :  { %p851_p7 = scmp.ne.s32.totalorder %s75_s13, %s850_s30  ;;  %p856_p9 = scmp.lt.s32.totalorder %s850_s30, %s850_s30 }
  0x4f   :  { %p857_p10 = por %p856_p9, %p855_p8 }
  0x51   :  { %p858_p11 = pnand %p857_p10, %p851_p7 }
  0x53   :  { %861 = shalt.err (!%p858_p11)
}
  0x54   :  { %80 = dma.hbm_to_vmem [thread:$0]  %s1125_s6, 2048, %s75_s13, [#allocation10], %s919_s14, %s919_s14, %s920_s17  }
  0x55   :  { %s923_s12 = smov [#allocation12]   ;;  %s862_s18 = scalar_lea.hbm %s1127_s8, 2048 }
  0x56   :  { %s88_s15 = sshll.u32 %s923_s12, 4  ;;  %p863_p12 = scmp.ne.s32.totalorder %s1127_s8, %s862_s18  ;;  %s89_s15 = int_to_ptr.vmem [resolvable:$true] %s88_s15 }
  0x57   :  { %p866_p13 = scmp.lt.u32.totalorder %s862_s18, %s1127_s8 }
  0x59   :  { %p868_p0 = pnand %p866_p13, %p863_p12 }
  0x5b   :  { %871 = shalt.err (!%p868_p0)
}
  0x5c   :  { %s872_s28 = scalar_lea.vmem %s89_s15, 2048  ;;  %p877_p2 = scmp.lt.s32.totalorder %s89_s15, %s89_s15 }
  0x5d   :  { %p873_p1 = scmp.ne.s32.totalorder %s89_s15, %s872_s28  ;;  %p878_p3 = scmp.lt.s32.totalorder %s872_s28, %s872_s28 }
  0x5f   :  { %p879_p4 = por %p878_p3, %p877_p2 }
  0x61   :  { %p880_p5 = pnand %p879_p4, %p873_p1 }
  0x63   :  { %883 = shalt.err (!%p880_p5)
}
  0x64   :  { %94 = dma.hbm_to_vmem [thread:$0]  %s1127_s8, 2048, %s89_s15, [#allocation13], %s919_s14, %s919_s14, %s920_s17  }
  0x65   :  { %906 = dma.done.wait [#allocation4], 128  }
  0x66   :  { %907 = vsyncadd [#allocation4], 4294967168 }
  0x67   :  { %908 = dma.done.wait [#allocation7], 1152  }
  0x68   :  { %909 = vsyncadd [#allocation7], 4294966144 }
  0x69   :  { %910 = dma.done.wait [#allocation10], 3072  }
  0x6a   :  { %911 = vsyncadd [#allocation10], 4294964224 }
  0x6b   :  { %912 = dma.done.wait [#allocation13], 2048  }
  0x6c   :  { %913 = vsyncadd [#allocation13], 4294965248  ;;  %v924_v0 = vmov 0.0|0.0   ;;  %vm925_vm0 = vmmov 0   ;;  %v926_v1 = vmov 0.0   ;;  %v126_v2 = vld [vmem:[#allocation9] sm:$0xff] }
  0x6d   :  { %666 = vmatprep.subr.bf16.mxu0 %v924_v0  ;;  %678 = vmatprep.subr.bf16.mxu1 %v924_v0  ;;  %v127_v3 = vld [vmem:[#allocation9 + $0x8] sm:$0xff]  ;;  %v118_v4 = vld [vmem:[#allocation8] sm:$0xff]  ;;  %v128_v7 = vld [vmem:[#allocation9 + $0x10] sm:$0xff]  ;;  %vm134_vm1 = vcmask 523264   ;;  %s927_s25 = smov [#allocation14]  }
  0x6e   :  { %574 = vmatprep.mubr.msk.f32.mxu0 %vm925_vm0, %v926_v1  ;;  %593 = vmatprep.mubr.msk.f32.mxu1 %vm925_vm0, %v926_v1  ;;  %v667_v5 = vpack.c.bf16 %v127_v3, %v126_v2  ;;  %v119_v6 = vld [vmem:[#allocation8 + $0x8] sm:$0xff]  ;;  %v129_v8 = vld [vmem:[#allocation9 + $0x18] sm:$0xff]  ;;  %v120_v10 = vld [vmem:[#allocation8 + $0x10] sm:$0xff]  ;;  %s489_s27 = sshll.u32 %s927_s25, 4  ;;  %s490_s27 = int_to_ptr.vmem [resolvable:$true] %s489_s27 }
  0x6f   :  { %v679_v9 = vpack.c.bf16 %v119_v6, %v118_v4  ;;  %v121_v11 = vld [vmem:[#allocation8 + $0x18] sm:$0xff]  ;;  %v670_v12 = vpack.c.bf16 %v129_v8, %v128_v7  ;;  %v130_v14 = vld [vmem:[#allocation9 + $0x20] sm:$0xff]  ;;  %v131_v15 = vld [vmem:[#allocation9 + $0x28] sm:$0xff]  ;;  %v289_v4 = vstv %s1119_s0  ;;  %p889_p7 = scmp.lt.s32.totalorder %s490_s27, %s490_s27 }
  0x70   :  { %668 = vmatpush3.bf16.msra.mxu0 %v667_v5  ;;  %v682_v13 = vpack.c.bf16 %v121_v11, %v120_v10  ;;  %v122_v16 = vld [vmem:[#allocation8 + $0x20] sm:$0xff]  ;;  %v123_v17 = vld [vmem:[#allocation8 + $0x28] sm:$0xff]  ;;  %v673_v18 = vpack.c.bf16 %v131_v15, %v130_v14  ;;  %v132_v20 = vld [vmem:[#allocation9 + $0x30] sm:$0xff] }
  0x71   :  { %680 = vmatpush3.bf16.msra.mxu1 %v679_v9  ;;  %669 = vmatprep.subr.bf16.mxu0 %v924_v0  ;;  %v685_v19 = vpack.c.bf16 %v123_v17, %v122_v16  ;;  %v133_v21 = vld [vmem:[#allocation9 + $0x38] sm:$0xff]  ;;  %v124_v22 = vld [vmem:[#allocation8 + $0x30] sm:$0xff]  ;;  %v291_v26 = vld [vmem:[#allocation11] sm:$0xff] }
  0x72   :  { %681 = vmatprep.subr.bf16.mxu1 %v924_v0  ;;  %v125_v23 = vld [vmem:[#allocation8 + $0x38] sm:$0xff]  ;;  %v676_v24 = vpack.c.bf16 %v133_v21, %v132_v20  ;;  %v292_v27 = vld [vmem:[#allocation11 + $0x8] sm:$0xff]  ;;  %v116_v30 = vld [vmem:[#allocation3] sm:$0xff] }
  0x73   :  { %v688_v25 = vpack.c.bf16 %v125_v23, %v124_v22  ;;  %v117_v28 = vld [vmem:[#allocation6] sm:$0xff]  ;;  %v691_v29 = vpack.c.bf16 %v292_v27, %v291_v26  ;;  %v293_v31 = vld [vmem:[#allocation11 + $0x10] sm:$0xff]  ;;  %v295_v34 = vld [vmem:[#allocation11 + $0x20] sm:$0xff] }
  0x74   :  { %671 = vmatpush3.bf16.msra.mxu0 %v670_v12  ;;  %v294_v32 = vld [vmem:[#allocation11 + $0x18] sm:$0xff]  ;;  %v296_v35 = vld [vmem:[#allocation11 + $0x28] sm:$0xff]  ;;  %v297_v37 = vld [vmem:[#allocation11 + $0x30] sm:$0xff] }
  0x75   :  { %683 = vmatpush3.bf16.msra.mxu1 %v682_v13  ;;  %672 = vmatprep.subr.bf16.mxu0 %v924_v0  ;;  %v694_v33 = vpack.c.bf16 %v294_v32, %v293_v31  ;;  %v697_v36 = vpack.c.bf16 %v296_v35, %v295_v34  ;;  %v298_v38 = vld [vmem:[#allocation11 + $0x38] sm:$0xff]  ;;  %v299_v40 = vld [vmem:[#allocation11 + $0x40] sm:$0xff]  ;;  %v300_v41 = vld [vmem:[#allocation11 + $0x48] sm:$0xff] }
  0x76   :  { %684 = vmatprep.subr.bf16.mxu1 %v924_v0  ;;  %v700_v39 = vpack.c.bf16 %v298_v38, %v297_v37  ;;  %v703_v42 = vpack.c.bf16 %v300_v41, %v299_v40  ;;  %v301_v43 = vld [vmem:[#allocation11 + $0x50] sm:$0xff]  ;;  %v302_v44 = vld [vmem:[#allocation11 + $0x58] sm:$0xff]  ;;  %v303_v46 = vld [vmem:[#allocation11 + $0x60] sm:$0xff] }
  0x77   :  { %v706_v45 = vpack.c.bf16 %v302_v44, %v301_v43  ;;  %v304_v47 = vld [vmem:[#allocation11 + $0x68] sm:$0xff]  ;;  %v305_v49 = vld [vmem:[#allocation11 + $0x70] sm:$0xff]  ;;  %v306_v50 = vld [vmem:[#allocation11 + $0x78] sm:$0xff] }
  0x78   :  { %674 = vmatpush3.bf16.msra.mxu0 %v673_v18  ;;  %v709_v48 = vpack.c.bf16 %v304_v47, %v303_v46  ;;  %v712_v51 = vpack.c.bf16 %v306_v50, %v305_v49  ;;  %v389_v52 = vld [vmem:[#allocation12] sm:$0xff]  ;;  %v390_v53 = vld [vmem:[#allocation12 + $0x8] sm:$0xff]  ;;  %v391_v54 = vld [vmem:[#allocation12 + $0x10] sm:$0xff] }
  0x79   :  { %686 = vmatpush3.bf16.msra.mxu1 %v685_v19  ;;  %675 = vmatprep.subr.bf16.mxu0 %v924_v0  ;;  %v715_v55 = vpack.c.bf16 %v390_v53, %v389_v52  ;;  %v392_v56 = vld [vmem:[#allocation12 + $0x18] sm:$0xff]  ;;  %v393_v58 = vld [vmem:[#allocation12 + $0x20] sm:$0xff]  ;;  %v394_v59 = vld [vmem:[#allocation12 + $0x28] sm:$0xff] }
  0x7a   :  { %687 = vmatprep.subr.bf16.mxu1 %v924_v0  ;;  %v718_v57 = vpack.c.bf16 %v392_v56, %v391_v54  ;;  %v721_v60 = vpack.c.bf16 %v394_v59, %v393_v58  ;;  %v503_v63 = vld [vmem:[%s1124_s5] ss:$0 sm:$0xff]  ;;  %v396_v8 = vld [vmem:[#allocation12 + $0x38] sm:$0xff]  ;;  %v397_v10 = vld [vmem:[#allocation12 + $0x40] sm:$0xff] }
  0x7b   :  { %v395_v7 = vld [vmem:[#allocation12 + $0x30] sm:$0xff]  ;;  %v398_v11 = vld [vmem:[#allocation12 + $0x48] sm:$0xff]  ;;  %v400_v14 = vld [vmem:[#allocation12 + $0x58] sm:$0xff] }
  0x7c   :  { %677 = vmatpush3.bf16.msra.mxu0 %v676_v24  ;;  %v724_v9 = vpack.c.bf16 %v396_v8, %v395_v7  ;;  %v727_v12 = vpack.c.bf16 %v398_v11, %v397_v10  ;;  %v399_v13 = vld [vmem:[#allocation12 + $0x50] sm:$0xff]  ;;  %v401_v16 = vld [vmem:[#allocation12 + $0x60] sm:$0xff]  ;;  %v402_v17 = vld [vmem:[#allocation12 + $0x68] sm:$0xff] }
  0x7d   :  { %689 = vmatpush3.bf16.msra.mxu1 %v688_v25  ;;  %690 = vmatprep.subr.bf16.mxu0 %v924_v0  ;;  %v730_v15 = vpack.c.bf16 %v400_v14, %v399_v13  ;;  %v733_v18 = vpack.c.bf16 %v402_v17, %v401_v16  ;;  %v403_v19 = vld [vmem:[#allocation12 + $0x70] sm:$0xff]  ;;  %v404_v20 = vld [vmem:[#allocation12 + $0x78] sm:$0xff] }
  0x7e   :  { %714 = vmatprep.subr.bf16.mxu1 %v924_v0  ;;  %v736_v21 = vpack.c.bf16 %v404_v20, %v403_v19  ;;  %v504_v22 = vld [vmem:[%s1126_s7] ss:$0 sm:$0xff]  ;;  %s884_s7 = scalar_lea.vmem %s490_s27, 128 }
  0x7f   :  { %575 = vmatmul.mubr.msk.f32.vlgmr.msra.gmra.mrb[0].mxu0 %vm134_vm1, %v117_v28  ;;  %p885_p6 = scmp.ne.s32.totalorder %s490_s27, %s884_s7  ;;  %p890_p8 = scmp.lt.s32.totalorder %s884_s7, %s884_s7 }
  0x80   :  { %594 = vmatmul.mubr.msk.f32.vlgmr.msra.gmra.mrb[0].mxu1 %vm134_vm1, %v116_v30  ;;  %692 = vmatpush3.bf16.msra.mxu0 %v691_v29 }
  0x81   :  { %693 = vmatprep.subr.bf16.mxu0 %v924_v0  ;;  %628 = vmatprep.mubr.msk.f32.mxu0 %vm925_vm0, %v926_v1  ;;  %p891_p9 = por %p890_p8, %p889_p7 }
  0x82   :  { %663 = vmatprep.mubr.msk.f32.mxu1 %vm925_vm0, %v926_v1  ;;  %716 = vmatpush3.bf16.msra.mxu1 %v715_v55 }
  0x83   :  { %717 = vmatprep.subr.bf16.mxu1 %v924_v0  ;;  %p892_p10 = pnand %p891_p9, %p885_p6 }
  0x84   :  { %695 = vmatpush3.bf16.msra.mxu0 %v694_v33 }
  0x85   :  { %696 = vmatprep.subr.bf16.mxu0 %v924_v0 }
  0x86   :  { %719 = vmatpush3.bf16.msra.mxu1 %v718_v57 }
  0x87   :  { %720 = vmatprep.subr.bf16.mxu1 %v924_v0 }
  0x88   :  { %698 = vmatpush3.bf16.msra.mxu0 %v697_v36 }
  0x89   :  { %699 = vmatprep.subr.bf16.mxu0 %v924_v0 }
  0x8a   :  { %722 = vmatpush3.bf16.msra.mxu1 %v721_v60 }
  0x8b   :  { %723 = vmatprep.subr.bf16.mxu1 %v924_v0 }
  0x8c   :  { %701 = vmatpush3.bf16.msra.mxu0 %v700_v39 }
  0x8d   :  { %702 = vmatprep.subr.bf16.mxu0 %v924_v0 }
  0x8e   :  { %725 = vmatpush3.bf16.msra.mxu1 %v724_v9 }
  0x8f   :  { %726 = vmatprep.subr.bf16.mxu1 %v924_v0 }
  0x90   :  { %704 = vmatpush3.bf16.msra.mxu0 %v703_v42 }
  0x91   :  { %705 = vmatprep.subr.bf16.mxu0 %v924_v0 }
  0x92   :  { %728 = vmatpush3.bf16.msra.mxu1 %v727_v12 }
  0x93   :  { %729 = vmatprep.subr.bf16.mxu1 %v924_v0 }
  0x94   :  { %707 = vmatpush3.bf16.msra.mxu0 %v706_v45 }
  0x95   :  { %708 = vmatprep.subr.bf16.mxu0 %v924_v0 }
  0x96   :  { %731 = vmatpush3.bf16.msra.mxu1 %v730_v15 }
  0x97   :  { %732 = vmatprep.subr.bf16.mxu1 %v924_v0 }
  0x98   :  { %710 = vmatpush3.bf16.msra.mxu0 %v709_v48 }
  0x99   :  { %711 = vmatprep.subr.bf16.mxu0 %v924_v0 }
  0x9a   :  { %734 = vmatpush3.bf16.msra.mxu1 %v733_v18 }
  0x9b   :  { %735 = vmatprep.subr.bf16.mxu1 %v924_v0  ;;  %v505_v0 = vld [vmem:[%s1128_s9] ss:$0 sm:$0xff] }
  0x9c   :  { %713 = vmatpush3.bf16.msra.mxu0 %v712_v51 }
  0x9e   :  { %737 = vmatpush3.bf16.msra.mxu1 %v736_v21 }
 0x152   :  { %v204_v61 = vpop.f32.mrb[0].mxu0 }
 0x153   :  { %v277_v62 = vpop.f32.mrb[0].mxu1  ;;  %v576_v1 = vpop.f32.mrb[1].mxu0 }
 0x154   :  { %v278_v2 = vadd.f32 %v277_v62, %v204_v61  ;;  %v595_v3 = vpop.f32.mrb[1].mxu1 }
 0x156   :  { %v288_v5 = vadd.f32 %v503_v63, %v278_v2 }
 0x158   :  { %v290_v6 = vmul.f32 %v289_v4, %v288_v5 }
 0x15a   :  { %629 = vmatmul.mubr.f32.vlgmr.msra.gmra.mrb[2].mxu0 %v290_v6 }
 0x22d   :  { %v380_v23 = vpop.f32.mrb[2].mxu0 }
 0x22e   :  { %v381_v24 = vadd.f32 %v504_v22, %v380_v23  ;;  %v630_v25 = vpop.f32.mrb[3].mxu0 }
 0x230   :  { %v385_v26 = vmul.f32 0.70710677, %v381_v24  ;;  %v384_v28 = vmul.f32 0.5, %v381_v24 }
 0x232   :  { %750 = verf.f32 %v385_v26 }
 0x23c   :  { %v751_v27 = vpop.eup %750 }
 0x23d   :  { %v387_v29 = vadd.f32 1.0, %v751_v27 }
 0x23f   :  { %v388_v30 = vmul.f32 %v387_v29, %v384_v28 }
 0x241   :  { %664 = vmatmul.mubr.f32.vlgmr.msra.gmra.mrb[2].mxu1 %v388_v30 }
 0x314   :  { %v478_v31 = vpop.f32.mrb[2].mxu1 }
 0x315   :  { %v479_v32 = vadd.f32 %v505_v0, %v478_v31  ;;  %v665_v33 = vpop.f32.mrb[3].mxu1 }
 0x317   :  { %482 = vst [vmem:[#allocation14] sm:$0xff] %v479_v32 }
 0x318   :  { %895 = shalt.err (!%p892_p10)
}
 0x319   :  { %s896_s26 = scalar_lea.hbm %s1129_s10, 128 }
 0x31a   :  { %p897_p11 = scmp.ne.s32.totalorder %s1129_s10, %s896_s26  ;;  %p900_p12 = scmp.lt.u32.totalorder %s896_s26, %s1129_s10 }
 0x31c   :  { %p902_p13 = pnand %p900_p12, %p897_p11 }
 0x31e   :  { %905 = shalt.err (!%p902_p13)
}
 0x31f   :  { %492 = dma.vmem_to_hbm [thread:$0]  %s490_s27, 128, %s1129_s10, [#allocation5]  }
 0x320   :  { %914 = dma.done.wait [#allocation5], 128  }
 0x321   :  { %915 = vsyncadd [#allocation5], 4294967168 }
 0x322   :  { %496 = vsyncpa [#allocation4], 1 }
 0x323   :  { %497 = vsyncpa [#allocation7], 1 }
 0x324   :  { %498 = vsyncpa [#allocation10], 1 }
 0x325   :  { %499 = vsyncpa [#allocation13], 1 }
 0x326   :  { %500 = vsyncpa [#allocation5], 1 }

</bundles_post_ra>
